<compile_context>
chip_gen: v7x
topology: tpu7x:2x2x1
jax: 0.10.0
libtpu: 0.0.40
codegen_flags: <defaults>
</compile_context>

<pallas_src>
import functools

import jax
import jax.numpy as jnp
from jax.experimental import pallas as pl
from jax.experimental.pallas import tpu as pltpu

_LANES = 128
_H1, _H2, _H3 = 64, 32, 16


def _round_up(n, m):
    return ((n + m - 1) // m) * m


def _cdiv(a, b):
    return -(-a // b)


# --------------------------------------------------------------------------
# Kernel
# --------------------------------------------------------------------------
def _actor_kernel(action_dim, action_bound,
                  s_ref, w1_ref, b1_ref, w2_ref, w3_ref, wh_ref,
                  mu_ref, std_ref):
    """One batch tile of the actor MLP.

    s_ref  : (TB, S)     f32   state tile
    w1_ref : (S, 128)    bf16  fc1 weights (lanes [0,64)), rest 0
    b1_ref : (1, 128)    f32   fc1 bias (lanes [0,64)), 1.0 at lane 64, rest 0
    w2_ref : (128, 128)  bf16  fc2 weights + bias row + ones-lane propagation
    w3_ref : (128, 128)  bf16  fc3 weights + bias row + ones-lane propagation
    wh_ref : (128, 128)  bf16  fused (fc4|fc5) head weights + bias row
    mu_ref : (TB, A)     f32   tanh(mu) * action_bound
    std_ref: (TB, A)     f32   softplus(std)
    """
    x = s_ref[...].astype(jnp.bfloat16)                                # (TB, S)

    # fc1 + ReLU.  The bias add also injects the constant-1 lane (lane 64).
    h = jnp.dot(x, w1_ref[...], preferred_element_type=jnp.float32) + b1_ref[...]
    h = jnp.maximum(h, 0.0)                                            # (TB, 128)

    # fc2 / fc3 + ReLU: biases folded into the matmul via the ones lane.
    h = jnp.maximum(
        jnp.dot(h.astype(jnp.bfloat16), w2_ref[...],
                preferred_element_type=jnp.float32), 0.0)
    h = jnp.maximum(
        jnp.dot(h.astype(jnp.bfloat16), w3_ref[...],
                preferred_element_type=jnp.float32), 0.0)

    # Fused head: lanes [0,A) = fc4 pre-activation, [A,2A) = fc5 pre-activation.
    head = jnp.dot(h.astype(jnp.bfloat16), wh_ref[...],
                   preferred_element_type=jnp.float32)                 # (TB, 128)

    mu = jnp.tanh(head) * action_bound
    # numerically stable softplus: max(x,0) + log1p(exp(-|x|))
    std = jnp.maximum(head, 0.0) + jnp.log1p(jnp.exp(-jnp.abs(head)))

    mu_ref[...] = mu[:, 0:action_dim]
    std_ref[...] = std[:, action_dim:2 * action_dim]


# --------------------------------------------------------------------------
# Host-side augmentation: MXU-ready bf16 weight blocks (biases folded in)
# --------------------------------------------------------------------------
def augment_params(params, state_dim, action_dim):
    assert 2 * action_dim <= _LANES, "fused head must fit in 128 lanes"
    assert _H1 + 1 <= _LANES and _H2 + 1 <= _LANES and _H3 + 1 <= _LANES

    f32 = jnp.float32
    w1a = jnp.zeros((state_dim, _LANES), f32).at[:, :_H1].set(params["w1"])
    b1a = (jnp.zeros((1, _LANES), f32)
           .at[0, :_H1].set(params["b1"].reshape(-1))
           .at[0, _H1].set(1.0))                      # ones-lane injection

    w2a = (jnp.zeros((_LANES, _LANES), f32)
           .at[:_H1, :_H2].set(params["w2"])
           .at[_H1, :_H2].set(params["b2"].reshape(-1))
           .at[_H1, _H2].set(1.0))                    # propagate ones lane

    w3a = (jnp.zeros((_LANES, _LANES), f32)
           .at[:_H2, :_H3].set(params["w3"])
           .at[_H2, :_H3].set(params["b3"].reshape(-1))
           .at[_H2, _H3].set(1.0))                    # propagate ones lane

    A = action_dim
    wha = (jnp.zeros((_LANES, _LANES), f32)
           .at[:_H3, :A].set(params["w4"])
           .at[:_H3, A:2 * A].set(params["w5"])
           .at[_H3, :A].set(params["b4"].reshape(-1))
           .at[_H3, A:2 * A].set(params["b5"].reshape(-1)))

    return dict(w1=w1a.astype(jnp.bfloat16), b1=b1a,
                w2=w2a.astype(jnp.bfloat16), w3=w3a.astype(jnp.bfloat16),
                wh=wha.astype(jnp.bfloat16))


# --------------------------------------------------------------------------
# Wrapper
# --------------------------------------------------------------------------
def actor_forward(state, aug, action_dim, action_bound, block_batch=1024):
    """state: (batch, state_dim) f32. Returns (mu*action_bound, std)."""
    batch, state_dim = state.shape

    # tb multiple of 8; cap so blocks + temporaries fit v5e's 16 MiB default
    # scoped VMEM; force >=2 grid steps when possible for v7x megacore.
    block_batch = max(8, _round_up(min(int(block_batch), 2048), 8))
    batch8 = _round_up(batch, 8)
    n_steps = _cdiv(batch8, block_batch)
    if batch8 >= 16:
        n_steps = max(n_steps, 2)
    tb = _round_up(_cdiv(batch8, n_steps), 8)
    batch_p = tb * n_steps

    if batch_p != batch:
        state = jnp.pad(state, ((0, batch_p - batch), (0, 0)))

    A = action_dim
    kernel = functools.partial(_actor_kernel, A, float(action_bound))

    cost = pl.CostEstimate(
        flops=2 * batch_p * (state_dim * _LANES + 3 * _LANES * _LANES),
        transcendentals=3 * batch_p * _LANES,
        bytes_accessed=(batch_p * state_dim * 4
                        + sum(int(v.size) * v.dtype.itemsize for v in aug.values())
                        + 2 * batch_p * A * 4),
    )

    mu, std = pl.pallas_call(
        kernel,
        out_shape=(jax.ShapeDtypeStruct((batch_p, A), jnp.float32),
                   jax.ShapeDtypeStruct((batch_p, A), jnp.float32)),
        grid=(batch_p // tb,),
        in_specs=[
            pl.BlockSpec((tb, state_dim), lambda i: (i, 0)),
            # constant index_map: weights DMA'd once, VMEM-resident
            pl.BlockSpec((state_dim, _LANES), lambda i: (0, 0)),
            pl.BlockSpec((1, _LANES), lambda i: (0, 0)),
            pl.BlockSpec((_LANES, _LANES), lambda i: (0, 0)),
            pl.BlockSpec((_LANES, _LANES), lambda i: (0, 0)),
            pl.BlockSpec((_LANES, _LANES), lambda i: (0, 0)),
        ],
        out_specs=(pl.BlockSpec((tb, A), lambda i: (i, 0)),
                   pl.BlockSpec((tb, A), lambda i: (i, 0))),
        compiler_params=pltpu.CompilerParams(
            dimension_semantics=("parallel",)),
        cost_estimate=cost,
    )(state, aug["w1"], aug["b1"], aug["w2"], aug["w3"], aug["wh"])

    if batch_p != batch:
        mu, std = mu[:batch], std[:batch]
    return mu, std


# --------------------------------------------------------------------------
# Params init + pure-JAX f32 reference
# --------------------------------------------------------------------------
def init_params(key, state_dim, action_dim):
    """PyTorch nn.Linear-like uniform fan-in init."""
    def linear(k, fan_in, fan_out):
        kw, kb = jax.random.split(k)
        bound = 1.0 / jnp.sqrt(fan_in)
        w = jax.random.uniform(kw, (fan_in, fan_out), jnp.float32, -bound, bound)
        b = jax.random.uniform(kb, (1, fan_out), jnp.float32, -bound, bound)
        return w, b

    keys = jax.random.split(key, 5)
    w1, b1 = linear(keys[0], state_dim, _H1)
    w2, b2 = linear(keys[1], _H1, _H2)
    w3, b3 = linear(keys[2], _H2, _H3)
    w4, b4 = linear(keys[3], _H3, action_dim)
    w5, b5 = linear(keys[4], _H3, action_dim)
    return dict(w1=w1, b1=b1, w2=w2, b2=b2, w3=w3, b3=b3,
                w4=w4, b4=b4, w5=w5, b5=b5)


def _reference_forward(state, params, action_bound):
    h = jax.nn.relu(state @ params["w1"] + params["b1"])
    h = jax.nn.relu(h @ params["w2"] + params["b2"])
    h = jax.nn.relu(h @ params["w3"] + params["b3"])
    mu = jnp.tanh(h @ params["w4"] + params["b4"]) * action_bound
    std = jax.nn.softplus(h @ params["w5"] + params["b5"])
    return mu, std


# --------------------------------------------------------------------------
if __name__ == "__main__":
    key = jax.random.PRNGKey(0)
    k_params, k_state = jax.random.split(key)

    batch, state_dim, action_dim = 16, 3, 1   # Pendulum-like A2C setup
    action_bound = 2.0

    params = init_params(k_params, state_dim, action_dim)
    state = jax.random.normal(k_state, (batch, state_dim), jnp.float32)

    aug = augment_params(params, state_dim, action_dim)

    # block_batch=8 -> grid=(2,): exercises resident weights + multi-step path
    mu, std = actor_forward(state, aug, action_dim, action_bound, block_batch=8)
    jax.block_until_ready((mu, std))

    mu_ref, std_ref = _reference_forward(state, params, action_bound)
    assert mu.shape == (batch, action_dim) and std.shape == (batch, action_dim)
    # bf16 matmul operands (f32 accumulation) -> loosened tolerance vs f32 ref
    assert jnp.allclose(mu, mu_ref, atol=5e-2, rtol=5e-2), "mu mismatch"
    assert jnp.allclose(std, std_ref, atol=5e-2, rtol=5e-2), "std mismatch"

    print("KERNEL_OK")
</pallas_src>

<mosaic_0001>
module attributes {stable_mosaic.version = 11 : i64} {
  func.func @_actor_kernel(%arg0: i32, %arg1: memref<8x3xf32, #tpu.memory_space<vmem>>, %arg2: memref<3x128xbf16, #tpu.memory_space<vmem>>, %arg3: memref<1x128xf32, #tpu.memory_space<vmem>>, %arg4: memref<128x128xbf16, #tpu.memory_space<vmem>>, %arg5: memref<128x128xbf16, #tpu.memory_space<vmem>>, %arg6: memref<128x128xbf16, #tpu.memory_space<vmem>>, %arg7: memref<8x1xf32, #tpu.memory_space<vmem>>, %arg8: memref<8x1xf32, #tpu.memory_space<vmem>>) attributes {dimension_semantics = [#tpu.dimension_semantics<parallel>], iteration_bounds = array<i64: 2>, scalar_prefetch = 0 : i64, scratch_operands = 0 : i64, tpu.core_type = #tpu.core_type<tc>, window_params = [{transform_indices = @transform_0, window_bounds = array<i64: 8, 3>}, {pipeline_mode = #tpu.pipeline_mode<synchronous>, transform_indices = @transform_1, window_bounds = array<i64: 3, 128>}, {pipeline_mode = #tpu.pipeline_mode<synchronous>, transform_indices = @transform_2, window_bounds = array<i64: 1, 128>}, {pipeline_mode = #tpu.pipeline_mode<synchronous>, transform_indices = @transform_3, window_bounds = array<i64: 128, 128>}, {pipeline_mode = #tpu.pipeline_mode<synchronous>, transform_indices = @transform_4, window_bounds = array<i64: 128, 128>}, {pipeline_mode = #tpu.pipeline_mode<synchronous>, transform_indices = @transform_5, window_bounds = array<i64: 128, 128>}, {transform_indices = @transform_6, window_bounds = array<i64: 8, 1>}, {transform_indices = @transform_7, window_bounds = array<i64: 8, 1>}]} {
    %c0 = arith.constant 0 : index
    %c0_0 = arith.constant 0 : index
    %0 = vector.load %arg1[%c0, %c0_0] : memref<8x3xf32, #tpu.memory_space<vmem>>, vector<8x3xf32>
    %1 = arith.truncf %0 : vector<8x3xf32> to vector<8x3xbf16>
    %c0_1 = arith.constant 0 : index
    %c0_2 = arith.constant 0 : index
    %2 = vector.load %arg2[%c0_1, %c0_2] : memref<3x128xbf16, #tpu.memory_space<vmem>>, vector<3x128xbf16>
    %cst = arith.constant dense<0.000000e+00> : vector<8x128xf32>
    %3 = tpu.matmul %1, %2, %cst {dimension_numbers = #tpu.dot_dimension_numbers<[1], [0], [0], [1], [0, 0, 1, 1], [], []>} : vector<8x3xbf16>, vector<3x128xbf16>, vector<8x128xf32> -> vector<8x128xf32>
    %c0_3 = arith.constant 0 : index
    %c0_4 = arith.constant 0 : index
    %4 = vector.load %arg3[%c0_3, %c0_4] : memref<1x128xf32, #tpu.memory_space<vmem>>, vector<1x128xf32>
    %5 = vector.broadcast %4 : vector<1x128xf32> to vector<8x128xf32>
    %6 = arith.addf %3, %5 : vector<8x128xf32>
    %cst_5 = arith.constant 0.000000e+00 : f32
    %7 = vector.broadcast %cst_5 : f32 to vector<8x128xf32>
    %8 = arith.maximumf %6, %7 : vector<8x128xf32>
    %9 = arith.truncf %8 : vector<8x128xf32> to vector<8x128xbf16>
    %c0_6 = arith.constant 0 : index
    %c0_7 = arith.constant 0 : index
    %10 = vector.load %arg4[%c0_6, %c0_7] : memref<128x128xbf16, #tpu.memory_space<vmem>>, vector<128x128xbf16>
    %cst_8 = arith.constant dense<0.000000e+00> : vector<8x128xf32>
    %11 = tpu.matmul %9, %10, %cst_8 {dimension_numbers = #tpu.dot_dimension_numbers<[1], [0], [0], [1], [0, 0, 1, 1], [], []>} : vector<8x128xbf16>, vector<128x128xbf16>, vector<8x128xf32> -> vector<8x128xf32>
    %cst_9 = arith.constant 0.000000e+00 : f32
    %12 = vector.broadcast %cst_9 : f32 to vector<8x128xf32>
    %13 = arith.maximumf %11, %12 : vector<8x128xf32>
    %14 = arith.truncf %13 : vector<8x128xf32> to vector<8x128xbf16>
    %c0_10 = arith.constant 0 : index
    %c0_11 = arith.constant 0 : index
    %15 = vector.load %arg5[%c0_10, %c0_11] : memref<128x128xbf16, #tpu.memory_space<vmem>>, vector<128x128xbf16>
    %cst_12 = arith.constant dense<0.000000e+00> : vector<8x128xf32>
    %16 = tpu.matmul %14, %15, %cst_12 {dimension_numbers = #tpu.dot_dimension_numbers<[1], [0], [0], [1], [0, 0, 1, 1], [], []>} : vector<8x128xbf16>, vector<128x128xbf16>, vector<8x128xf32> -> vector<8x128xf32>
    %cst_13 = arith.constant 0.000000e+00 : f32
    %17 = vector.broadcast %cst_13 : f32 to vector<8x128xf32>
    %18 = arith.maximumf %16, %17 : vector<8x128xf32>
    %19 = arith.truncf %18 : vector<8x128xf32> to vector<8x128xbf16>
    %c0_14 = arith.constant 0 : index
    %c0_15 = arith.constant 0 : index
    %20 = vector.load %arg6[%c0_14, %c0_15] : memref<128x128xbf16, #tpu.memory_space<vmem>>, vector<128x128xbf16>
    %cst_16 = arith.constant dense<0.000000e+00> : vector<8x128xf32>
    %21 = tpu.matmul %19, %20, %cst_16 {dimension_numbers = #tpu.dot_dimension_numbers<[1], [0], [0], [1], [0, 0, 1, 1], [], []>} : vector<8x128xbf16>, vector<128x128xbf16>, vector<8x128xf32> -> vector<8x128xf32>
    %22 = math.tanh %21 : vector<8x128xf32>
    %cst_17 = arith.constant 2.000000e+00 : f32
    %23 = vector.broadcast %cst_17 : f32 to vector<8x128xf32>
    %24 = arith.mulf %22, %23 : vector<8x128xf32>
    %cst_18 = arith.constant 0.000000e+00 : f32
    %25 = vector.broadcast %cst_18 : f32 to vector<8x128xf32>
    %26 = arith.maximumf %21, %25 : vector<8x128xf32>
    %27 = math.absf %21 : vector<8x128xf32>
    %cst_19 = arith.constant 0.000000e+00 : f32
    %28 = vector.broadcast %cst_19 : f32 to vector<8x128xf32>
    %29 = arith.subf %28, %27 : vector<8x128xf32>
    %30 = math.exp %29 : vector<8x128xf32>
    %31 = math.log1p %30 : vector<8x128xf32>
    %32 = arith.addf %26, %31 : vector<8x128xf32>
    %33 = vector.extract_strided_slice %24 {offsets = [0, 0], sizes = [8, 1], strides = [1, 1]} : vector<8x128xf32> to vector<8x1xf32>
    %c0_20 = arith.constant 0 : index
    %c0_21 = arith.constant 0 : index
    %34 = vector.load %arg7[%c0_20, %c0_21] : memref<8x1xf32, #tpu.memory_space<vmem>>, vector<8x1xf32>
    tpu.vector_store %arg7[%c0_20, %c0_21], %33 {strides = array<i32>} : memref<8x1xf32, #tpu.memory_space<vmem>>, vector<8x1xf32>,
    %35 = vector.extract_strided_slice %32 {offsets = [0, 1], sizes = [8, 1], strides = [1, 1]} : vector<8x128xf32> to vector<8x1xf32>
    %c0_22 = arith.constant 0 : index
    %c0_23 = arith.constant 0 : index
    %36 = vector.load %arg8[%c0_22, %c0_23] : memref<8x1xf32, #tpu.memory_space<vmem>>, vector<8x1xf32>
    tpu.vector_store %arg8[%c0_22, %c0_23], %35 {strides = array<i32>} : memref<8x1xf32, #tpu.memory_space<vmem>>, vector<8x1xf32>,
    return
  }
  func.func @transform_0(%arg0: i32) -> (i32, i32) {
    %c0_i32 = arith.constant 0 : i32
    %c0_i32_0 = arith.constant 0 : i32
    return %arg0, %c0_i32 : i32, i32
  }
  func.func @transform_1(%arg0: i32) -> (i32, i32) {
    %c0_i32 = arith.constant 0 : i32
    %c0_i32_0 = arith.constant 0 : i32
    %c0_i32_1 = arith.constant 0 : i32
    return %c0_i32, %c0_i32_0 : i32, i32
  }
  func.func @transform_2(%arg0: i32) -> (i32, i32) {
    %c0_i32 = arith.constant 0 : i32
    %c0_i32_0 = arith.constant 0 : i32
    %c0_i32_1 = arith.constant 0 : i32
    return %c0_i32, %c0_i32_0 : i32, i32
  }
  func.func @transform_3(%arg0: i32) -> (i32, i32) {
    %c0_i32 = arith.constant 0 : i32
    %c0_i32_0 = arith.constant 0 : i32
    %c0_i32_1 = arith.constant 0 : i32
    return %c0_i32, %c0_i32_0 : i32, i32
  }
  func.func @transform_4(%arg0: i32) -> (i32, i32) {
    %c0_i32 = arith.constant 0 : i32
    %c0_i32_0 = arith.constant 0 : i32
    %c0_i32_1 = arith.constant 0 : i32
    return %c0_i32, %c0_i32_0 : i32, i32
  }
  func.func @transform_5(%arg0: i32) -> (i32, i32) {
    %c0_i32 = arith.constant 0 : i32
    %c0_i32_0 = arith.constant 0 : i32
    %c0_i32_1 = arith.constant 0 : i32
    return %c0_i32, %c0_i32_0 : i32, i32
  }
  func.func @transform_6(%arg0: i32) -> (i32, i32) {
    %c0_i32 = arith.constant 0 : i32
    %c0_i32_0 = arith.constant 0 : i32
    return %arg0, %c0_i32 : i32, i32
  }
  func.func @transform_7(%arg0: i32) -> (i32, i32) {
    %c0_i32 = arith.constant 0 : i32
    %c0_i32_0 = arith.constant 0 : i32
    return %arg0, %c0_i32 : i32, i32
  }
}

</mosaic_0001>

<bundles_post_ra>
// kernel: tpu_custom_call.1
= control target key start
LH: loop header
LB: loop body
LE: loop exit
PB: predicated region body
PF: predicated region fallthrough
CT: control target
= control target key end

     0   :  { %13 = vsyncpa [#allocation3], 0  ;;  %s1385_s0 = inlined_call_operand.vmem [shape: f32[16,3], index: 0, kind: input, shape index: {}]   ;;  %s1386_s1 = inlined_call_operand.vmem [shape: bf16[3,128], index: 1, kind: input, shape index: {}]   ;;  %s1387_s2 = inlined_call_operand.vmem [shape: f32[1,128], index: 2, kind: input, shape index: {}]   ;;  %s1388_s3 = inlined_call_operand.hbm [shape: bf16[128,128], index: 3, kind: input, shape index: {}]   ;;  %s1389_s4 = inlined_call_operand.hbm [shape: bf16[128,128], index: 4, kind: input, shape index: {}]   ;;  %s1390_s5 = inlined_call_operand.hbm [shape: bf16[128,128], index: 5, kind: input, shape index: {}]   ;;  %s1391_s6 = inlined_call_operand.vmem [shape: f32[16,1], index: 6, kind: output, shape index: {0}]   ;;  %s1392_s7 = inlined_call_operand.vmem [shape: f32[16,1], index: 7, kind: output, shape index: {1}]  }
   0x1   :  { %14 = vsyncpa [#allocation5], 0  ;;  %s1209_s24 = smov 0  }
   0x2 LB: > { %s1215_s25 = sadd.s32 4294967295, %s1158_s24   ;;  %p850_p0 = scmp.ge.s32.totalorder %s1158_s24, 1  ;;  %s1158_s24 = sphi %s1209_s24, %s20_s24  }
   0x3   : > { %p208_p1 = scmp.lt.s32.totalorder %s1158_s24, 3  ;;  %p1393_p2 = scmp.eq.s32.totalorder %s1215_s25, 0 }
   0x4   : > { %s1160_s27 = smov [#allocation4]   ;;  %s1161_s29 = smov [#allocation2]  }
   0x5   : > { %p1220_p3 = pnand %p850_p0, %p208_p1  ;;  %s239_s28 = sshll.u32 %s1160_s27, 4  ;;  %s240_s28 = int_to_ptr.vmem [resolvable:$true] %s239_s28 }
   0x6   : > { %s226_s30 = sshll.u32 %s1161_s29, 4  ;;  %s1162_s9 = smov [#allocation6]   ;;  %s1232_s30 = int_to_ptr.vmem [resolvable:$true] %s226_s30 }
   0x7   : > { %s1395_s26 = scalar_select %p1220_p3, 1, 0 }
   0x8   : > { %p997_p4 = pneg %p1220_p3  ;;  %s252_s10 = sshll.u32 %s1162_s9, 4  ;;  %s1234_s10 = int_to_ptr.vmem [resolvable:$true] %s252_s10 }
   0x9   : > { %s1060_s13 = scalar_lea.hbm %s1389_s4, 1024 }
   0xa   : > { %p1228_p5 = pnand %p1393_p2, %p997_p4  ;;  %p1061_p6 = scmp.ne.s32.totalorder %s1389_s4, %s1060_s13 }
   0xb   : > { %p1067_p10 = scmp.lt.u32.totalorder %s1060_s13, %s1389_s4 }
   0xc   : > { %p1244_p7 = pneg %p1228_p5 }
   0xe   : > { %p1063_p8 = pnand %p1244_p7, %p1061_p6 }
  0x10   : > { %p1064_p9 = pneg %p1063_p8 }
  0x12   : > { %p1069_p11 = pnand %p1067_p10, %p1064_p9 }
  0x14   : > { %1072 = shalt.err (!%p1069_p11)
}
  0x15   : > { %s1073_s19 = scalar_lea.vmem %s240_s28, 1024  ;;  %p1081_p1 = scmp.lt.s32.totalorder %s240_s28, %s240_s28 }
  0x16   : > { %p1074_p12 = scmp.ne.s32.totalorder %s240_s28, %s1073_s19  ;;  %p1082_p4 = scmp.lt.s32.totalorder %s1073_s19, %s1073_s19 }
  0x18   : > { %p1076_p13 = pnand %p1074_p12, %p1244_p7  ;;  %p1083_p2 = por %p1082_p4, %p1081_p1 }
  0x1a   : > { %p1077_p0 = pneg %p1076_p13 }
  0x1c   : > { %p1084_p3 = pnand %p1083_p2, %p1077_p0 }
  0x1e   : > { %1087 = shalt.err (!%p1084_p3)
}
  0x1f   : > { %s1163_s20 = smov 64   ;;  %s1164_s21 = smov 4  }
  0x20   : > { %1003 = dma.hbm_to_vmem [thread:$0]  (!%p1228_p5), %s1389_s4, 1024, %s240_s28, [#allocation5], %s1163_s20, %s1163_s20, %s1164_s21  }
  0x21   : > { %s1088_s9 = scalar_lea.hbm %s1388_s3, 1024 }
  0x22   : > { %p1089_p2 = scmp.ne.s32.totalorder %s1388_s3, %s1088_s9  ;;  %p1095_p8 = scmp.lt.u32.totalorder %s1088_s9, %s1388_s3 }
  0x24   : > { %p1091_p3 = pnand %p1089_p2, %p1244_p7 }
  0x26   : > { %p1092_p6 = pneg %p1091_p3 }
  0x28   : > { %p1097_p9 = pnand %p1095_p8, %p1092_p6 }
  0x2a   : > { %1100 = shalt.err (!%p1097_p9)
}
  0x2b   : > { %s1101_s28 = scalar_lea.vmem %s1232_s30, 1024  ;;  %p1109_p13 = scmp.lt.s32.totalorder %s1232_s30, %s1232_s30 }
  0x2c   : > { %p1102_p10 = scmp.ne.s32.totalorder %s1232_s30, %s1101_s28  ;;  %p1110_p0 = scmp.lt.s32.totalorder %s1101_s28, %s1101_s28 }
  0x2e   : > { %p1104_p11 = pnand %p1102_p10, %p1244_p7  ;;  %p1111_p1 = por %p1110_p0, %p1109_p13 }
  0x30   : > { %p1105_p12 = pneg %p1104_p11 }
  0x32   : > { %p1112_p4 = pnand %p1111_p1, %p1105_p12 }
  0x34   : > { %1115 = shalt.err (!%p1112_p4)
}
  0x35   : > { %1000 = dma.hbm_to_vmem [thread:$0]  (!%p1228_p5), %s1388_s3, 1024, %s1232_s30, [#allocation3], %s1163_s20, %s1163_s20, %s1164_s21  }
  0x36   : > { %s1116_s22 = scalar_lea.hbm %s1390_s5, 1024 }
  0x37   : > { %p1117_p2 = scmp.ne.s32.totalorder %s1390_s5, %s1116_s22  ;;  %p1123_p8 = scmp.lt.u32.totalorder %s1116_s22, %s1390_s5 }
  0x39   : > { %p1119_p3 = pnand %p1117_p2, %p1244_p7 }
  0x3b   : > { %p1120_p6 = pneg %p1119_p3 }
  0x3d   : > { %p1125_p9 = pnand %p1123_p8, %p1120_p6 }
  0x3f   : > { %1128 = shalt.err (!%p1125_p9)
}
  0x40   : > { %s1129_s30 = scalar_lea.vmem %s1234_s10, 1024  ;;  %p1137_p13 = scmp.lt.s32.totalorder %s1234_s10, %s1234_s10 }
  0x41   : > { %p1130_p10 = scmp.ne.s32.totalorder %s1234_s10, %s1129_s30  ;;  %p1138_p0 = scmp.lt.s32.totalorder %s1129_s30, %s1129_s30 }
  0x43   : > { %p1132_p11 = pnand %p1130_p10, %p1244_p7  ;;  %p1139_p1 = por %p1138_p0, %p1137_p13 }
  0x45   : > { %p1133_p12 = pneg %p1132_p11 }
  0x47   : > { %p1140_p4 = pnand %p1139_p1, %p1133_p12 }
  0x49   : > { %1143 = shalt.err (!%p1140_p4)
}
  0x4a   : > { %1006 = dma.hbm_to_vmem [thread:$0]  (!%p1228_p5), %s1390_s5, 1024, %s1234_s10, [#allocation5], %s1163_s20, %s1163_s20, %s1164_s21  }
  0x4b   : > { %p1398_p2 = scmp.ne.s32.totalorder %s1395_s26, 0 }
  0x4c   : > { %p1399_p7 = scmp.eq.s32.totalorder (!%p1398_p2), %s1215_s25, 0 }
  0x4d   : > { %275 = sbr.rel (%p1398_p2) target bundleno = 1111 (0x457), region = 44 }
  0x54   : > { %1149 = dma.done.wait (%p1399_p7), [#allocation3], 1024   ;;  %p1400_p3 = pmov %p1399_p7 }
  0x56   : > { %1151 = vsyncadd (%p1400_p3), [#allocation3], 4294966272  ;;  %p1401_p6 = pmov %p1400_p3 }
  0x57   : > { %p1402_p8 = pmov %p1400_p3 }
  0x58   : > { %1153 = dma.done.wait (%p1401_p6), [#allocation5], 2048  }
  0x59   : > { %1155 = vsyncadd (%p1402_p8), [#allocation5], 4294965248  ;;  %vm344_vm0 = vcmask 1040384   ;;  %v1165_v0 = vmov 0.0   ;;  %p317_p5 = scmp.lt.s32.totalorder %s1215_s25, 1  ;;  %vm345_vm1 = vcmask 1041408  }
  0x5a   : > { %919 = vmatprep.subr.bf16.mxu0 %v1165_v0  ;;  %925 = vmatprep.subr.bf16.mxu1 %v1165_v0  ;;  %v1166_v1 = vmov 65535   ;;  %vm1167_vm2 = vmmov 0   ;;  %v332_v4 = vld [vmem:[%s1386_s1] sm:$0x3]  ;;  %vm340_vm3 = vcmask 23552   ;;  %v1031_v9 = vld [vmem:[#allocation2 + $0x8] sm:$0xff]  }
  0x5b   : > { %v346_v2 = vsel %vm344_vm0, 4294967295, %v1166_v1  ;;  %921 = vmatprep.mubr.msk.bf16.mxu0 %vm1167_vm2, %v1165_v0  ;;  %941 = vmatprep.mubr.msk.bf16.mxu1 %vm1167_vm2, %v1165_v0  ;;  %s1404_s25 = smov (!%p317_p5, %s1215_s25), 1  ;;  %v1030_v7 = vld [vmem:[#allocation2] sm:$0xff]   ;;  %v1032_v10 = vld [vmem:[#allocation2 + $0x10] sm:$0xff]   ;;  %v1033_v11 = vld [vmem:[#allocation2 + $0x18] sm:$0xff]   ;;  %vm726_vm4 = vcmask 7168  }
  0x5c   : > { %v347_v3 = vsel %vm345_vm1, %v346_v2, 0  ;;  %s1333_s26 = sshll.u32 %s1404_s25, 3  ;;  %926 = vmatpush3.bf16.msra.mxu1 %v1030_v7  ;;  %v1034_v12 = vld [vmem:[#allocation2 + $0x20] sm:$0xff]   ;;  %v1035_v13 = vld [vmem:[#allocation2 + $0x28] sm:$0xff]   ;;  %v1036_v14 = vld [vmem:[#allocation2 + $0x30] sm:$0xff]   ;;  %s1168_s17 = smov 127  }
  0x5d   : > { %s320_s16 = scalar_lea.vmem %s1385_s0, %s1333_s26  ;;  %v349_v6 = vand.u32 %v347_v3, %v332_v4  ;;  %927 = vmatprep.subr.bf16.mxu1 %v1165_v0  ;;  %v1037_v15 = vld [vmem:[#allocation2 + $0x38] sm:$0xff]   ;;  %v1038_v16 = vld [vmem:[#allocation4] sm:$0xff]   ;;  %v1039_v17 = vld [vmem:[#allocation4 + $0x8] sm:$0xff]   ;;  %s324_s15 = scalar_lea.vmem %s1391_s6, %s1333_s26 }
  0x5e   : > { %v330_v5 = vld [vmem:[%s320_s16] sm:$0xff]  ;;  %v1040_v18 = vld [vmem:[#allocation4 + $0x10] sm:$0xff]   ;;  %v1041_v19 = vld [vmem:[#allocation4 + $0x18] sm:$0xff]   ;;  %s328_s22 = scalar_lea.vmem %s1392_s7, %s1333_s26 }
  0x5f   : > { %v331_v8 = vpack.c.bf16 %v330_v5, %v330_v5  ;;  %920 = vmatpush3.bf16.msra.mxu0 %v349_v6  ;;  %v1042_v20 = vld [vmem:[#allocation4 + $0x20] sm:$0xff]   ;;  %v1043_v21 = vld [vmem:[#allocation4 + $0x28] sm:$0xff]   ;;  %v1044_v22 = vld [vmem:[#allocation4 + $0x30] sm:$0xff]  }
  0x60   : > { %945 = vmatprep.subr.bf16.mxu0 %v1165_v0  ;;  %928 = vmatpush3.bf16.msra.mxu1 %v1031_v9  ;;  %v862_v23 = vld [vmem:[%s1387_s2] ss:$0 sm:$0xff]  ;;  %v1045_v31 = vld [vmem:[#allocation4 + $0x38] sm:$0xff]   ;;  %v1047_v33 = vld [vmem:[#allocation6 + $0x8] sm:$0xff]  }
  0x61   : > { %929 = vmatprep.subr.bf16.mxu1 %v1165_v0  ;;  %v1046_v32 = vld [vmem:[#allocation6] sm:$0xff]   ;;  %v1048_v34 = vld [vmem:[#allocation6 + $0x10] sm:$0xff]   ;;  %v1049_v35 = vld [vmem:[#allocation6 + $0x18] sm:$0xff]  }
  0x62   : > { %922 = vmatmul.mubr.msk.bf16.vlgmr.msra.gmra.mrb[0].mxu0 %vm340_vm3, %v331_v8  ;;  %v1050_v36 = vld [vmem:[#allocation6 + $0x20] sm:$0xff]   ;;  %v1051_v37 = vld [vmem:[#allocation6 + $0x28] sm:$0xff]   ;;  %v1052_v38 = vld [vmem:[#allocation6 + $0x30] sm:$0xff]  }
  0x63   : > { %961 = vmatprep.mubr.msk.bf16.mxu0 %vm1167_vm2, %v1165_v0  ;;  %946 = vmatpush3.bf16.msra.mxu0 %v1038_v16  ;;  %v1053_v45 = vld [vmem:[#allocation6 + $0x38] sm:$0xff]  }
  0x64   : > { %930 = vmatpush3.bf16.msra.mxu1 %v1032_v10  ;;  %947 = vmatprep.subr.bf16.mxu0 %v1165_v0 }
  0x65   : > { %931 = vmatprep.subr.bf16.mxu1 %v1165_v0 }
  0x67   : > { %948 = vmatpush3.bf16.msra.mxu0 %v1039_v17 }
  0x68   : > { %932 = vmatpush3.bf16.msra.mxu1 %v1033_v11  ;;  %949 = vmatprep.subr.bf16.mxu0 %v1165_v0 }
  0x69   : > { %933 = vmatprep.subr.bf16.mxu1 %v1165_v0 }
  0x6b   : > { %950 = vmatpush3.bf16.msra.mxu0 %v1040_v18 }
  0x6c   : > { %934 = vmatpush3.bf16.msra.mxu1 %v1034_v12  ;;  %951 = vmatprep.subr.bf16.mxu0 %v1165_v0 }
  0x6d   : > { %935 = vmatprep.subr.bf16.mxu1 %v1165_v0 }
  0x6f   : > { %952 = vmatpush3.bf16.msra.mxu0 %v1041_v19 }
  0x70   : > { %936 = vmatpush3.bf16.msra.mxu1 %v1035_v13  ;;  %953 = vmatprep.subr.bf16.mxu0 %v1165_v0 }
  0x71   : > { %937 = vmatprep.subr.bf16.mxu1 %v1165_v0 }
  0x73   : > { %954 = vmatpush3.bf16.msra.mxu0 %v1042_v20 }
  0x74   : > { %938 = vmatpush3.bf16.msra.mxu1 %v1036_v14  ;;  %955 = vmatprep.subr.bf16.mxu0 %v1165_v0 }
  0x75   : > { %939 = vmatprep.subr.bf16.mxu1 %v1165_v0 }
  0x77   : > { %956 = vmatpush3.bf16.msra.mxu0 %v1043_v21 }
  0x78   : > { %940 = vmatpush3.bf16.msra.mxu1 %v1037_v15  ;;  %957 = vmatprep.subr.bf16.mxu0 %v1165_v0 }
  0x79   : > { %965 = vmatprep.subr.bf16.mxu1 %v1165_v0 }
  0x7b   : > { %958 = vmatpush3.bf16.msra.mxu0 %v1044_v22 }
  0x7c   : > { %959 = vmatprep.subr.bf16.mxu0 %v1165_v0 }
  0x7f   : > { %960 = vmatpush3.bf16.msra.mxu0 %v1045_v31 }
 0x135   : > { %v385_v24 = vpop.f32.mrb[0].mxu0 }
 0x136   : > { %v386_v25 = vadd.f32 %v862_v23, %v385_v24  ;;  %v923_v26 = vpop.f32.mrb[1].mxu0 }
 0x137   : > { %v388_v27 = vpop.f32.mrb[2].mxu0 }
 0x138   : > { %v391_v28 = vmax.f32 %v386_v25, 0.0  ;;  %v924_v29 = vpop.f32.mrb[3].mxu0 }
 0x13a   : > { %v392_v30 = vpack.c.bf16 %v391_v28, %v391_v28 }
 0x13c   : > { %942 = vmatmul.mubr.bf16.vlgmr.msra.gmra.mrb[0].mxu1 %v392_v30 }
 0x13d   : > { %981 = vmatprep.mubr.msk.bf16.mxu1 %vm1167_vm2, %v1165_v0  ;;  %966 = vmatpush3.bf16.msra.mxu1 %v1046_v32 }
 0x13e   : > { %967 = vmatprep.subr.bf16.mxu1 %v1165_v0 }
 0x141   : > { %968 = vmatpush3.bf16.msra.mxu1 %v1047_v33 }
 0x142   : > { %969 = vmatprep.subr.bf16.mxu1 %v1165_v0 }
 0x145   : > { %970 = vmatpush3.bf16.msra.mxu1 %v1048_v34 }
 0x146   : > { %971 = vmatprep.subr.bf16.mxu1 %v1165_v0 }
 0x149   : > { %972 = vmatpush3.bf16.msra.mxu1 %v1049_v35 }
 0x14a   : > { %973 = vmatprep.subr.bf16.mxu1 %v1165_v0 }
 0x14d   : > { %974 = vmatpush3.bf16.msra.mxu1 %v1050_v36 }
 0x14e   : > { %975 = vmatprep.subr.bf16.mxu1 %v1165_v0 }
 0x151   : > { %976 = vmatpush3.bf16.msra.mxu1 %v1051_v37 }
 0x152   : > { %977 = vmatprep.subr.bf16.mxu1 %v1165_v0 }
 0x155   : > { %978 = vmatpush3.bf16.msra.mxu1 %v1052_v38 }
 0x156   : > { %979 = vmatprep.subr.bf16.mxu1 %v1165_v0 }
 0x159   : > { %980 = vmatpush3.bf16.msra.mxu1 %v1053_v45 }
 0x20f   : > { %v491_v39 = vpop.f32.mrb[0].mxu1 }
 0x210   : > { %v497_v40 = vmax.f32 %v491_v39, 0.0  ;;  %v943_v41 = vpop.f32.mrb[1].mxu1 }
 0x211   : > { %v494_v42 = vpop.f32.mrb[2].mxu1 }
 0x212   : > { %v498_v43 = vpack.c.bf16 %v497_v40, %v497_v40  ;;  %v944_v44 = vpop.f32.mrb[3].mxu1 }
 0x214   : > { %962 = vmatmul.mubr.bf16.vlgmr.msra.gmra.mrb[4].mxu0 %v498_v43 }
 0x2e7   : > { %v597_v46 = vpop.f32.mrb[4].mxu0 }
 0x2e8   : > { %v603_v47 = vmax.f32 %v597_v46, 0.0  ;;  %v963_v48 = vpop.f32.mrb[5].mxu0 }
 0x2e9   : > { %v600_v49 = vpop.f32.mrb[6].mxu0 }
 0x2ea   : > { %v604_v50 = vpack.c.bf16 %v603_v47, %v603_v47  ;;  %v964_v51 = vpop.f32.mrb[7].mxu0 }
 0x2ec   : > { %982 = vmatmul.mubr.bf16.vlgmr.msra.gmra.mrb[4].mxu1 %v604_v50 }
 0x3bf   : > { %v703_v52 = vpop.f32.mrb[4].mxu1 }
 0x3c0   : > { %1054 = vtanh.f32 %v703_v52  ;;  %v712_v53 = vand.u32 2147483647, %v703_v52  ;;  %v983_v54 = vpop.f32.mrb[5].mxu1  ;;  %v711_v5 = vmax.f32 %v703_v52, 0.0 }
 0x3c1   : > { %v706_v55 = vpop.f32.mrb[6].mxu1 }
 0x3c2   : > { %v713_v56 = vsub.f32 0.0, %v712_v53  ;;  %v984_v57 = vpop.f32.mrb[7].mxu1 }
 0x3c4   : > { %v714_v58 = vmul.f32 1.442695, %v713_v56 }
 0x3c6   : > { %1056 = vpow2.f32 %v714_v58 }
 0x3ca   : > { %v1055_v59 = vpop.eup %1054 }
 0x3cb   : > { %v710_v60 = vmul.f32 2.0, %v1055_v59 }
 0x3cd   : > { %727 = vst.msk [vmem:[%s324_s15] sm:$0xff] %vm726_vm4, %v710_v60 }
 0x3d0   : > { %v1057_v61 = vpop.eup %1056 }
 0x3d1   : > { %v716_v62 = vadd.f32 1.0, %v1057_v61  ;;  %v719_v63 = vmul.f32 -0.5, %v1057_v61  ;;  %v722_v1 = vand.u32 2147483647, %v1057_v61 }
 0x3d3   : > { %1058 = vlog2.f32 %v716_v62  ;;  %v720_v0 = vadd.f32 1.0, %v719_v63  ;;  %vm723_vm5 = vcmp.lt.f32.partialorder %v722_v1, 0.0004427343 }
 0x3d5   : > { %v721_v4 = vmul.f32 %v1057_v61, %v720_v0 }
 0x3dd   : > { %v1059_v2 = vpop.eup %1058 }
 0x3de   : > { %v718_v3 = vmul.f32 0.6931472, %v1059_v2 }
 0x3e0   : > { %v724_v6 = vsel %vm723_vm5, %v721_v4, %v718_v3 }
 0x3e1   : > { %v725_v7 = vadd.f32 %v724_v6, %v711_v5 }
 0x3e3   : > { %729 = vrot.lane.b32.xlu0 %v725_v7, %s1168_s17 }
 0x455   : > { %v730_v8 = vpop.permute.xlu0 %729 }
 0x456   : > { %732 = vst.msk [vmem:[%s328_s22] sm:$0xff] %vm726_vm4, %v730_v8 }
 0x457 PF: > { %s20_s24 = sadd.s32 1, %s1158_s24  }
 0x458   : > { %p17_p9 = scmp.ge.s32.totalorder %s20_s24, 4  }
 0x45a   :  { %19 = sbr.rel (!%p17_p9) target bundleno = 2 (0x2), region = 99 }
 0x461   :  { %766 = vsyncpa [#allocation3], 1 }
 0x462   :  { %768 = vsyncpa [#allocation3 + $0x1], 1 }
 0x463   :  { %769 = vsyncpa [#allocation5], 1 }

</bundles_post_ra>
